<compile_context>
chip_gen: v7x
topology: tpu7x:2x2x1
jax: 0.10.0
libtpu: 0.0.40
codegen_flags: <defaults>
</compile_context>

<pallas_src>
import numpy as np
import jax
import jax.numpy as jnp
from jax.experimental import pallas as pl
from jax.experimental.pallas import tpu as pltpu

# ---------------------------------------------------------------------------
# Deterministic "haar" taps (pywt.Wavelet('haar').rec_lo / rec_hi).
# ---------------------------------------------------------------------------
_SQRT2_OVER_2 = float(np.sqrt(2.0) / 2.0)
HAAR_REC_LO = np.array([_SQRT2_OVER_2, _SQRT2_OVER_2], dtype=np.float32)
HAAR_REC_HI = np.array([_SQRT2_OVER_2, -_SQRT2_OVER_2], dtype=np.float32)


def _stacked_width_matrix(w_in, wo, dtype):
    """AWT = [lo | hi] width downsample matrix, shape (w_in, 2*wo).

    The 1/sqrt(2) height coefficient is folded in, so entries are exactly
    +-0.5 (exactly representable in bf16).  A trailing odd input column maps
    to an all-zero row, so odd W needs no pre-kernel crop.
    """
    awt = np.zeros((w_in, 2 * wo), dtype=np.float32)
    for j in range(wo):
        awt[2 * j, j] = 0.5
        awt[2 * j + 1, j] = 0.5
        awt[2 * j, wo + j] = 0.5
        awt[2 * j + 1, wo + j] = -0.5
    return jnp.asarray(awt, dtype)


def _round_up(a, b):
    return -(-a // b) * b


def _choose_tile_rows(total_rows, lane_elems, itemsize, align,
                      block_budget_bytes=4 << 20):
    """Input rows per grid step (always even; grid uses cdiv + partial last block)."""
    budget_rows = max(align, block_budget_bytes // max(1, lane_elems * itemsize))
    tr = max(align, (budget_rows // align) * align)
    if tr >= total_rows:
        # Whole row extent fits one tile: still split in two (keeps pipelining
        # alive and gives both v7x TensorCores work) when it is big enough.
        if total_rows >= 2 * align:
            half = _round_up(-(-total_rows // 2), align)
            tr = half if half < total_rows else total_rows
        else:
            tr = total_rows
    return tr


# ---------------------------------------------------------------------------
# Kernels.  Height pass on the VPU via sublane-strided even/odd row loads,
# width pass on the MXU via one stacked [lo | hi] filter matrix.
# ---------------------------------------------------------------------------
def _height_then_width(x_ref, awt_ref, tro):
    # TODO(synk): audit the strided-sublane load lowering for packed (bf16/int8)
    # inputs in a bundle dump; switch to a roll+select split if it expands badly.
    x_even = x_ref[pl.ds(0, tro, 2), :].astype(jnp.float32)   # rows 0,2,4,...
    x_odd = x_ref[pl.ds(1, tro, 2), :].astype(jnp.float32)    # rows 1,3,5,...
    y_lo = x_even + x_odd          # height low-pass  (coefficient lives in AWT)
    y_hi = x_even - x_odd          # height high-pass
    awt = awt_ref[...]
    if awt.dtype != jnp.float32:   # bf16 MXU path for sub-f32 inputs (exact 0.5 taps)
        y_lo = y_lo.astype(awt.dtype)
        y_hi = y_hi.astype(awt.dtype)
    z_lo = jnp.dot(y_lo, awt, preferred_element_type=jnp.float32)   # [LL | LH]
    z_hi = jnp.dot(y_hi, awt, preferred_element_type=jnp.float32)   # [HL | HH]
    return z_lo, z_hi


def _dwt_kernel_split(x_ref, awt_ref, ll_ref, lh_ref, hl_ref, hh_ref):
    tro, wo = ll_ref.shape
    z_lo, z_hi = _height_then_width(x_ref, awt_ref, tro)
    ll_ref[...] = z_lo[:, :wo].astype(ll_ref.dtype)
    lh_ref[...] = z_lo[:, wo:].astype(lh_ref.dtype)
    hl_ref[...] = z_hi[:, :wo].astype(hl_ref.dtype)
    hh_ref[...] = z_hi[:, wo:].astype(hh_ref.dtype)


def _dwt_kernel_fused(x_ref, awt_ref, out_ref):
    tro = out_ref.shape[0]
    z_lo, z_hi = _height_then_width(x_ref, awt_ref, tro)
    # Single lane-dense store of the fused [LL | LH | HL | HH] block.
    out_ref[...] = jnp.concatenate([z_lo, z_hi], axis=-1).astype(out_ref.dtype)


# ---------------------------------------------------------------------------
# Wrapper.
# ---------------------------------------------------------------------------
def dwt_2d(x, pad_type="reflect", stride=2):
    """Pallas implementation of DWT_2D.forward (haar wavelet, depthwise).

    x: (N, C, H, W).  Returns (LL, LH, HL, HH), each (N, C, H//2, W//2),
    in the input dtype (compute in f32 / f32-accumulated MXU).
    """
    assert x.ndim == 4
    assert stride == 2
    N, C, H, W = x.shape
    assert H >= 2 and W >= 2
    # haar: kernel_size=2 -> pad_sizes=[0,0,0,0]; F.pad is a no-op (pad_type unused).

    Ho, Wo = H // 2, W // 2
    He = 2 * Ho
    if H != He:
        # TODO(synk): odd H forces a materialized crop; could be absorbed into a
        # per-image height index_map instead of the flattened-row layout.
        x = x[:, :, :He, :]
    # Odd W needs no crop: the width matrix has a zero row for the last column.

    BC = N * C
    total_rows = BC * He
    xf = x.reshape(total_rows, W)            # free reshape (collapse leading dims)

    out_dtype = x.dtype
    itemsize = jnp.dtype(x.dtype).itemsize
    # bf16/fp16 inputs: bf16 width matmul (taps +-0.5 are exact); f32 stays f32.
    mm_dtype = jnp.float32 if itemsize >= 4 else jnp.bfloat16
    align = 16 if itemsize >= 4 else 32      # keep TRo sublane-aligned when packed

    four_out = (Wo % 128 == 0)               # four lane-dense bands, no de-interleave

    # Width tiling for large W: constant (TW, TW)-sized AWT block, linear MXU work.
    tw = 0
    if four_out and W > 512:
        for cand in (512, 256):
            if W % cand == 0:
                tw = cand
                break

    if tw:
        wb, wob = tw, tw // 2
        w_grid = W // tw
        awt = _stacked_width_matrix(tw, wob, mm_dtype)
    else:
        wb, wob = W, Wo
        w_grid = 1
        awt = _stacked_width_matrix(W, Wo, mm_dtype)

    tr = _choose_tile_rows(total_rows, wb, itemsize, align)
    tro = tr // 2
    r_grid = -(-total_rows // tr)

    # Per-step VMEM need: double-buffered in/out blocks + f32 intermediates + AWT.
    in_block = tr * wb * itemsize
    out_block = tro * 4 * wob * itemsize
    inter = (4 * tro * wb + 2 * tro * 2 * wob) * 4
    awt_bytes = int(np.prod(awt.shape)) * jnp.dtype(mm_dtype).itemsize
    vmem_limit = min(max(2 * in_block + 2 * out_block + inter + 2 * awt_bytes
                         + (8 << 20), 32 << 20), 56 << 20)

    if tw:
        grid = (r_grid, w_grid)
        x_spec = pl.BlockSpec((tr, tw), lambda n, w: (n, w))
        awt_spec = pl.BlockSpec(awt.shape, lambda n, w: (0, 0))
        band_spec = pl.BlockSpec((tro, wob), lambda n, w: (n, w))
        dims = ("parallel", "parallel")
        fused_spec = None
    else:
        grid = (r_grid,)
        x_spec = pl.BlockSpec((tr, W), lambda n: (n, 0))
        awt_spec = pl.BlockSpec(awt.shape, lambda n: (0, 0))
        band_spec = pl.BlockSpec((tro, Wo), lambda n: (n, 0))
        fused_spec = pl.BlockSpec((tro, 4 * Wo), lambda n: (n, 0))
        dims = ("parallel",)

    cparams = pltpu.CompilerParams(dimension_semantics=dims,
                                   vmem_limit_bytes=vmem_limit)

    if four_out:
        band_shape = jax.ShapeDtypeStruct((BC * Ho, Wo), out_dtype)
        ll, lh, hl, hh = pl.pallas_call(
            _dwt_kernel_split,
            out_shape=(band_shape,) * 4,
            grid=grid,
            in_specs=[x_spec, awt_spec],
            out_specs=(band_spec,) * 4,
            compiler_params=cparams,
        )(xf, awt)
        rs = lambda a: a.reshape(N, C, Ho, Wo)
        return rs(ll), rs(lh), rs(hl), rs(hh)

    out = pl.pallas_call(
        _dwt_kernel_fused,
        out_shape=jax.ShapeDtypeStruct((BC * Ho, 4 * Wo), out_dtype),
        grid=grid,
        in_specs=[x_spec, awt_spec],
        out_specs=fused_spec,
        compiler_params=cparams,
    )(xf, awt)
    out = out.reshape(N, C, Ho, 4, Wo)
    return (out[:, :, :, 0, :],   # LL
            out[:, :, :, 1, :],   # LH
            out[:, :, :, 2, :],   # HL
            out[:, :, :, 3, :])   # HH


# ---------------------------------------------------------------------------
# Pure-JAX reference (mirrors F.conv2d(..., stride=2, groups=C) exactly).
# ---------------------------------------------------------------------------
def _reference_dwt_2d(x):
    N, C, H, W = x.shape
    lo, hi = HAAR_REC_LO, HAAR_REC_HI
    outs = []
    for fil in (np.outer(lo, lo), np.outer(lo, hi),
                np.outer(hi, lo), np.outer(hi, hi)):
        w = jnp.broadcast_to(jnp.asarray(fil, jnp.float32)[None, None],
                             (C, 1, 2, 2))
        outs.append(jax.lax.conv_general_dilated(
            x.astype(jnp.float32), w, window_strides=(2, 2), padding="VALID",
            dimension_numbers=("NCHW", "OIHW", "NCHW"),
            feature_group_count=C))
    return tuple(outs)


if __name__ == "__main__":
    key = jax.random.PRNGKey(0)
    cases = [
        (2, 4, 16, 16),    # small: fused [LL|LH|HL|HH] lane-dense output path
        (1, 2, 16, 256),   # Wo % 128 == 0: four separate lane-dense outputs
        (1, 1, 8, 1024),   # large W: width-tiled grid (TW=512), four outputs
        (1, 3, 15, 17),    # odd H/W: trailing row/col dropped (VALID conv)
    ]
    for shp in cases:
        key, sub = jax.random.split(key)
        x = jax.random.normal(sub, shp, dtype=jnp.float32)
        outs = jax.block_until_ready(dwt_2d(x))
        refs = _reference_dwt_2d(x)
        for o, r in zip(outs, refs):
            np.testing.assert_allclose(np.asarray(o, dtype=np.float32),
                                       np.asarray(r), rtol=1e-5, atol=1e-5)
    print("KERNEL_OK")
</pallas_src>

<mosaic_0001>
module attributes {stable_mosaic.version = 11 : i64} {
  func.func @_dwt_kernel_fused(%arg0: i32, %arg1: memref<64x16xf32, #tpu.memory_space<vmem>>, %arg2: memref<16x16xf32, #tpu.memory_space<vmem>>, %arg3: memref<32x32xf32, #tpu.memory_space<vmem>>) attributes {dimension_semantics = [#tpu.dimension_semantics<parallel>], iteration_bounds = array<i64: 2>, scalar_prefetch = 0 : i64, scratch_operands = 0 : i64, tpu.core_type = #tpu.core_type<tc>, window_params = [{transform_indices = @transform_0, window_bounds = array<i64: 64, 16>}, {pipeline_mode = #tpu.pipeline_mode<synchronous>, transform_indices = @transform_1, window_bounds = array<i64: 16, 16>}, {transform_indices = @transform_2, window_bounds = array<i64: 32, 32>}]} {
    %c0 = arith.constant 0 : index
    %c0_0 = arith.constant 0 : index
    %0 = tpu.strided_load %arg1[%c0, %c0_0] {strides = array<i32: 2, 1>} : memref<64x16xf32, #tpu.memory_space<vmem>>, vector<32x16xf32>
    %c1 = arith.constant 1 : index
    %c0_1 = arith.constant 0 : index
    %1 = tpu.strided_load %arg1[%c1, %c0_1] {strides = array<i32: 2, 1>} : memref<64x16xf32, #tpu.memory_space<vmem>>, vector<32x16xf32>
    %2 = arith.addf %0, %1 : vector<32x16xf32>
    %3 = arith.subf %0, %1 : vector<32x16xf32>
    %c0_2 = arith.constant 0 : index
    %c0_3 = arith.constant 0 : index
    %4 = vector.load %arg2[%c0_2, %c0_3] : memref<16x16xf32, #tpu.memory_space<vmem>>, vector<16x16xf32>
    %cst = arith.constant dense<0.000000e+00> : vector<32x16xf32>
    %5 = tpu.matmul %2, %4, %cst {dimension_numbers = #tpu.dot_dimension_numbers<[1], [0], [0], [1], [0, 0, 1, 1], [], []>} : vector<32x16xf32>, vector<16x16xf32>, vector<32x16xf32> -> vector<32x16xf32>
    %cst_4 = arith.constant dense<0.000000e+00> : vector<32x16xf32>
    %6 = tpu.matmul %3, %4, %cst_4 {dimension_numbers = #tpu.dot_dimension_numbers<[1], [0], [0], [1], [0, 0, 1, 1], [], []>} : vector<32x16xf32>, vector<16x16xf32>, vector<32x16xf32> -> vector<32x16xf32>
    %7 = tpu.concatenate %5, %6 in 1 : vector<32x16xf32>, vector<32x16xf32> -> vector<32x32xf32>
    %c0_5 = arith.constant 0 : index
    %c0_6 = arith.constant 0 : index
    %8 = vector.load %arg3[%c0_5, %c0_6] : memref<32x32xf32, #tpu.memory_space<vmem>>, vector<32x32xf32>
    tpu.vector_store %arg3[%c0_5, %c0_6], %7 {strides = array<i32>} : memref<32x32xf32, #tpu.memory_space<vmem>>, vector<32x32xf32>,
    return
  }
  func.func @transform_0(%arg0: i32) -> (i32, i32) {
    %c0_i32 = arith.constant 0 : i32
    %c0_i32_0 = arith.constant 0 : i32
    return %arg0, %c0_i32 : i32, i32
  }
  func.func @transform_1(%arg0: i32) -> (i32, i32) {
    %c0_i32 = arith.constant 0 : i32
    %c0_i32_0 = arith.constant 0 : i32
    %c0_i32_1 = arith.constant 0 : i32
    return %c0_i32, %c0_i32_0 : i32, i32
  }
  func.func @transform_2(%arg0: i32) -> (i32, i32) {
    %c0_i32 = arith.constant 0 : i32
    %c0_i32_0 = arith.constant 0 : i32
    return %arg0, %c0_i32 : i32, i32
  }
}

</mosaic_0001>

<bundles_post_ra>
// kernel: tpu_custom_call.1
= control target key start
LH: loop header
LB: loop body
LE: loop exit
PB: predicated region body
PF: predicated region fallthrough
CT: control target
= control target key end

     0   :  { %s547_s9 = smov 0   ;;  %s586_s0 = inlined_call_operand.vmem [shape: f32[128,16], index: 0, kind: input, shape index: {}]   ;;  %s587_s1 = inlined_call_operand.vmem [shape: f32[16,16], index: 1, kind: input, shape index: {}]   ;;  %s588_s2 = inlined_call_operand.vmem [shape: f32[64,32], index: 2, kind: output, shape index: {}]  }
   0x1 LB: > { %s448_s10 = sadd.s32 4294967295, %s529_s9   ;;  %p452_p0 = scmp.ge.s32.totalorder %s529_s9, 1  ;;  %s529_s9 = sphi %s547_s9, %s12_s9  }
   0x2   : > { %p113_p1 = scmp.lt.s32.totalorder %s529_s9, 3 }
   0x4   : > { %p114_p2 = pnand %p452_p0, %p113_p1 }
   0x5   : > { %v170_v0 = vld [vmem:[%s587_s1] sm:$0xff] (!%p114_p2)  ;;  %v171_v1 = vld [vmem:[%s587_s1 + $0x8] sm:$0xff] (!%p114_p2)  ;;  %s453_s15 = sshll.u32 (!%p114_p2), %s448_s10, 3  ;;  %vm172_vm0 = vcmask (!%p114_p2), 130048   ;;  %s531_s20 = smov (!%p114_p2), 16   ;;  %vm387_vm1 = vcmask (!%p114_p2), 261120  }
   0x6   : > { %117 = sbr.rel (%p114_p2) target bundleno = 358 (0x166), region = 28  ;;  %v506_v2 = vpack.c.bf16 (!%p114_p2), %v171_v1, %v170_v0  ;;  %p136_p3 = scmp.lt.s32.totalorder (!%p114_p2), %s453_s15, 15 }
   0x7   : > { %s455_s21 = sshll.u32 (!%p114_p2), %s448_s10, 2 }
   0x8   : > { %511 = vmatprep.subr.bf16.mxu1 (!%p114_p2), %v506_v2  ;;  %507 = vmatprep.subr.bf16.mxu0 (!%p114_p2), %v506_v2  ;;  %p142_p4 = scmp.lt.s32.totalorder (!%p114_p2), %s455_s21, 7 }
   0x9   : > { %513 = vmatpush3.bf16.msra.mxu1 (!%p114_p2), %v506_v2  ;;  %509 = vmatpush3.bf16.msra.mxu0 (!%p114_p2), %v506_v2 }
   0xd   : > { %s590_s15 = smov (!%p136_p3, %s453_s15), 15  ;;  %s592_s21 = smov (!%p142_p4, %s455_s21), 7 }
   0xe   : > { %s454_s16 = sshll.u32 %s590_s15, 3  ;;  %s456_s22 = sshll.u32 %s592_s21, 3 }
   0xf   : > { %s139_s19 = scalar_lea.vmem %s586_s0, %s454_s16  ;;  %s145_s25 = scalar_lea.vmem %s588_s2, %s456_s22 }
  0x10   : > { %v147_v3 = vld [vmem:[%s139_s19] ss:$2 sm:$0xff]  ;;  %v460_v4 = vld [vmem:[%s139_s19 + $0x1] ss:$2 sm:$0xff]  ;;  %v457_v5 = vld [vmem:[%s139_s19 + $0x10] ss:$2 sm:$0xff] }
  0x11   : > { %v166_v6 = vsub.f32 %v147_v3, %v460_v4  ;;  %v461_v7 = vld [vmem:[%s139_s19 + $0x11] ss:$2 sm:$0xff]  ;;  %v458_v8 = vld [vmem:[%s139_s19 + $0x20] ss:$2 sm:$0xff]  ;;  %v462_v9 = vld [vmem:[%s139_s19 + $0x21] ss:$2 sm:$0xff]  ;;  %v162_v10 = vadd.f32 %v460_v4, %v147_v3 }
  0x12   : > { %v167_v11 = vsub.f32 %v457_v5, %v461_v7  ;;  %v168_v12 = vsub.f32 %v458_v8, %v462_v9  ;;  %v459_v13 = vld [vmem:[%s139_s19 + $0x30] ss:$2 sm:$0xff]  ;;  %v463_v14 = vld [vmem:[%s139_s19 + $0x31] ss:$2 sm:$0xff]  ;;  %v163_v15 = vadd.f32 %v461_v7, %v457_v5  ;;  %v164_v16 = vadd.f32 %v462_v9, %v458_v8 }
  0x13   : > { %500 = vmatprep.mubr.msk.f32.mxu1 %vm172_vm0, %v166_v6  ;;  %490 = vmatprep.mubr.msk.f32.mxu0 %vm172_vm0, %v162_v10  ;;  %v169_v17 = vsub.f32 %v459_v13, %v463_v14  ;;  %v165_v18 = vadd.f32 %v463_v14, %v459_v13 }
  0x14   : > { %501 = vmatmul.mubr.msk.f32.vlgmr.msra.gmra.mrb[0].mxu1 %vm172_vm0, %v167_v11  ;;  %491 = vmatmul.mubr.msk.f32.vlgmr.msra.gmra.mrb[0].mxu0 %vm172_vm0, %v163_v15 }
  0x15   : > { %503 = vmatprep.mubr.msk.f32.mxu1 %vm172_vm0, %v168_v12  ;;  %493 = vmatprep.mubr.msk.f32.mxu0 %vm172_vm0, %v164_v16 }
  0x18   : > { %504 = vmatmul.mubr.msk.f32.gmra.mrb[2].mxu1 %vm172_vm0, %v169_v17  ;;  %494 = vmatmul.mubr.msk.f32.gmra.mrb[2].mxu0 %vm172_vm0, %v165_v18 }
  0xe7   : > { %v502_v19 = vpop.f32.mrb[0].mxu1  ;;  %v492_v20 = vpop.f32.mrb[0].mxu0 }
  0xe8   : > { %v348_v21 = vpop.f32.mrb[1].mxu1  ;;  %v251_v22 = vpop.f32.mrb[1].mxu0 }
  0xe9   : > { %371 = vrot.lane.b32.xlu0 %v348_v21, %s531_s20 }
  0xeb   : > { %v505_v23 = vpop.f32.mrb[2].mxu1  ;;  %v495_v24 = vpop.f32.mrb[2].mxu0 }
  0xec   : > { %v358_v25 = vpop.f32.mrb[3].mxu1  ;;  %v261_v26 = vpop.f32.mrb[3].mxu0 }
  0xed   : > { %373 = vrot.lane.b32.xlu0 %v502_v19, %s531_s20  ;;  %375 = vrot.lane.b32.xlu1 %v358_v25, %s531_s20 }
  0xf1   : > { %377 = vrot.lane.b32.xlu1 %v505_v23, %s531_s20 }
 0x15b   : > { %v372_v27 = vpop.permute.xlu0 %371 }
 0x15c   : > { %v383_v28 = vsel %vm172_vm0, %v251_v22, %v372_v27 }
 0x15d   : > { %388 = vst.msk [vmem:[%s145_s25] sm:$0xff] %vm387_vm1, %v383_v28 }
 0x15f   : > { %v374_v29 = vpop.permute.xlu0 %373  ;;  %v376_v30 = vpop.permute.xlu1 %375 }
 0x160   : > { %v384_v31 = vsel %vm172_vm0, %v492_v20, %v374_v29  ;;  %v385_v32 = vsel %vm172_vm0, %v261_v26, %v376_v30 }
 0x161   : > { %389 = vst.msk [vmem:[%s145_s25 + $0x8] sm:$0xff] %vm387_vm1, %v384_v31  ;;  %390 = vst.msk [vmem:[%s145_s25 + $0x10] sm:$0xff] %vm387_vm1, %v385_v32 }
 0x163   : > { %v378_v33 = vpop.permute.xlu1 %377 }
 0x164   : > { %v386_v34 = vsel %vm172_vm0, %v495_v24, %v378_v33 }
 0x165   : > { %391 = vst.msk [vmem:[%s145_s25 + $0x18] sm:$0xff] %vm387_vm1, %v386_v34 }
 0x166 PF: > { %s12_s9 = sadd.s32 1, %s529_s9  }
 0x167   : > { %p9_p5 = scmp.ge.s32.totalorder %s12_s9, 4  }
 0x169   :  { %11 = sbr.rel (!%p9_p5) target bundleno = 1 (0x1), region = 65 }

</bundles_post_ra>
